<compile_context>
chip_gen: v6e
topology: v6e:2x2x1
jax: 0.10.0
libtpu: 0.0.40
codegen_flags: <defaults>
</compile_context>

<pallas_src>
import numpy as np
import jax
import jax.numpy as jnp
from jax import lax
from jax.experimental import pallas as pl
from jax.experimental.pallas import tpu as pltpu

LANE = 128
SUBLANE = 8


def _round_up(x, m):
    return -(-x // m) * m


def _nearest_indices(in_size, out_size):
    # PyTorch F.interpolate(mode='nearest'): src = floor(dst * in/out), clamped.
    scale = in_size / out_size
    idx = np.floor(np.arange(out_size) * scale).astype(np.int32)
    return np.clip(idx, 0, in_size - 1)


def _pad2d(x, rows, cols):
    x = jnp.asarray(x, jnp.float32)
    out = jnp.zeros((rows, cols), jnp.float32)
    return out.at[: x.shape[0], : x.shape[1]].set(x)


# ---------------------------------------------------------------------------
# Pallas kernel: softplus(fc) -> (interp+conv1 as matmul) -> (conv2 as matmul)
# ---------------------------------------------------------------------------
def conv_dec_kernel(z_ref, fcw_ref, fcb_ref, m1_ref, b1_ref, m2_ref, b2_ref,
                    out_ref):
    """One batch block.

    z_ref:   (BB, K0)  f32   latent codes (zero-padded to K0 lanes)
    fcw_ref: (K0, H1)  bf16  fc weight, transposed + padded ; fcb_ref: (1, H1) f32
    m1_ref:  (H1, H2)  bf16  reshape+interp+conv1 folded    ; b1_ref:  (1, H2) f32
    m2_ref:  (H2, SL)  bf16  conv2 folded                   ; b2_ref:  (1, SL) f32
    out_ref: (BB, SL)  f32   output block (real rows in [:B])
    """
    # fc + Softplus (stable form; f32 elementwise so it works on v5e too).
    z = z_ref[...].astype(jnp.bfloat16)
    u = jnp.dot(z, fcw_ref[...], preferred_element_type=jnp.float32) + fcb_ref[...]
    h = jnp.maximum(u, 0.0) + jnp.log(1.0 + jnp.exp(-jnp.abs(u)))      # (BB, H1)
    # NOTE: padded H1 columns of h equal softplus(0)=ln(2); they are nullified
    # by the zero rows 100..H1-1 of m1 — keep that invariant if padding changes.

    # interp + conv1 (folded) + LeakyReLU(0.25)
    a1 = jnp.dot(h.astype(jnp.bfloat16), m1_ref[...],
                 preferred_element_type=jnp.float32) + b1_ref[...]
    a1 = jnp.where(a1 >= 0.0, a1, 0.25 * a1)                           # (BB, H2)

    # conv2 (folded) + LeakyReLU(0.25) + Sigmoid
    a2 = jnp.dot(a1.astype(jnp.bfloat16), m2_ref[...],
                 preferred_element_type=jnp.float32) + b2_ref[...]
    a2 = jnp.where(a2 >= 0.0, a2, 0.25 * a2)                           # (BB, SL)
    out_ref[...] = pl.reciprocal(1.0 + jnp.exp(-a2), approx=True)


# ---------------------------------------------------------------------------
# Fold interp/convs into dense matrices (weights only; done once).
# ---------------------------------------------------------------------------
def _fold_operators(params, sl):
    """Build M1:(100,5*sl), B1:(5*sl,), M2:(5*sl,sl), B2:(sl,) from the weights."""
    c1_w = params["c1_w"]                     # (5, 10, 3)
    c2_w = params["c2_w"]                     # (1, 5, 3)
    L_in, K = 10, 3
    hi = jax.lax.Precision.HIGHEST

    # Nearest-interp selection matrix S: (L_in, sl), S[l, i] = 1 iff idx[i] == l
    idx = _nearest_indices(L_in, sl)
    S = np.zeros((L_in, sl), np.float32)
    S[idx, np.arange(sl)] = 1.0

    # Conv tap shift matrices (padding=1): T[k, p, j] = 1 iff p == j + k - 1
    T = np.zeros((K, sl, sl), np.float32)
    for k in range(K):
        for j in range(sl):
            p = j + k - 1
            if 0 <= p < sl:
                T[k, p, j] = 1.0
    S = jnp.asarray(S)
    T = jnp.asarray(T)

    # M1[(ci, l), (co, j)] = sum_k S[l, j+k-1] * c1_w[co, ci, k]
    M1 = jnp.einsum("lp,kpj,oik->iloj", S, T, c1_w, precision=hi)
    M1 = M1.reshape(10 * L_in, 5 * sl)
    B1 = jnp.repeat(params["c1_b"], sl)                       # (5*sl,)

    # M2[(ci, p), j] = sum_k T[k, p, j] * c2_w[0, ci, k]
    M2 = jnp.einsum("kpj,oik->ipoj", T, c2_w, precision=hi)
    M2 = M2.reshape(5 * sl, 1 * sl)
    B2 = jnp.repeat(params["c2_b"], sl)                       # (sl,)
    return M1, B1, M2, B2


# ---------------------------------------------------------------------------
# Wrapper factory: fold + pad + cast weights ONCE, return a jitted forward(z).
# ---------------------------------------------------------------------------
def build_conv_dec(params, sl, *, max_block=1024):
    z_dim = params["fc_w"].shape[1]
    M1, B1, M2, B2 = _fold_operators(params, sl)

    K0 = _round_up(max(z_dim, 16), 16)        # small lane pad (bf16-tile friendly)
    H1 = _round_up(100, LANE)                 # fc output features
    H2 = _round_up(5 * sl, LANE)              # conv1 output features (flat)

    # Padded operands (weights bf16 for native-rate MXU; biases stay f32).
    fcw_p = _pad2d(jnp.transpose(params["fc_w"]), K0, H1).astype(jnp.bfloat16)
    fcb_p = _pad2d(params["fc_b"][None, :], 1, H1)
    m1_p = _pad2d(M1, H1, H2).astype(jnp.bfloat16)   # zero pad rows kill softplus(0)
    b1_p = _pad2d(B1[None, :], 1, H2)
    m2_p = _pad2d(M2, H2, sl).astype(jnp.bfloat16)
    b2_p = _pad2d(B2[None, :], 1, sl)

    @jax.jit
    def forward(z):
        B = z.shape[0]
        B8 = _round_up(max(B, SUBLANE), SUBLANE)
        if B8 <= SUBLANE:
            BB = B8                           # tiny batch: one step
        else:
            # big blocks to amortize per-step overhead, but keep >= 2 grid
            # steps so the "parallel" axis can shard across v7x's 2 TCs.
            BB = min(_round_up(-(-B8 // 2), SUBLANE), max_block)
        B_pad = _round_up(B8, BB)

        z_p = jnp.pad(z.astype(jnp.float32),
                      ((0, B_pad - B), (0, K0 - z_dim)))       # (B_pad, K0)

        full = lambda r, c: pl.BlockSpec((r, c), lambda i: (0, 0))
        out_p = pl.pallas_call(
            conv_dec_kernel,
            out_shape=jax.ShapeDtypeStruct((B_pad, sl), jnp.float32),
            grid=(B_pad // BB,),
            in_specs=[
                pl.BlockSpec((BB, K0), lambda i: (i, 0)),
                full(K0, H1), full(1, H1),
                full(H1, H2), full(1, H2),
                full(H2, sl), full(1, sl),
            ],
            out_specs=pl.BlockSpec((BB, sl), lambda i: (i, 0)),
            compiler_params=pltpu.CompilerParams(
                dimension_semantics=("parallel",)),
        )(z_p, fcw_p, fcb_p, m1_p, b1_p, m2_p, b2_p)

        out = out_p[:B, :]
        # Mirror PyTorch .squeeze(): a batch of 1 collapses to (sl,).
        return out[0] if B == 1 else out

    return forward


def conv_dec_forward(z, params, sl):
    """Convenience one-shot API (builds + calls; prefer build_conv_dec for reuse)."""
    return build_conv_dec(params, sl)(z)


# ---------------------------------------------------------------------------
# Pure-JAX reference with real interpolate + Conv1d (for correctness check).
# ---------------------------------------------------------------------------
def conv_dec_reference(z, params, sl):
    B = z.shape[0]
    hi = jax.lax.Precision.HIGHEST
    h = jax.nn.softplus(jnp.dot(z, params["fc_w"].T, precision=hi)
                        + params["fc_b"])                      # (B, 100)
    x = h.reshape(B, 10, 10)
    idx = _nearest_indices(10, sl)
    x = x[:, :, idx]                                           # (B, 10, sl)
    y = lax.conv_general_dilated(x, params["c1_w"], window_strides=(1,),
                                 padding=((1, 1),),
                                 dimension_numbers=("NCH", "OIH", "NCH"),
                                 precision=hi)
    y = jax.nn.leaky_relu(y + params["c1_b"][None, :, None], 0.25)
    y = lax.conv_general_dilated(y, params["c2_w"], window_strides=(1,),
                                 padding=((1, 1),),
                                 dimension_numbers=("NCH", "OIH", "NCH"),
                                 precision=hi)
    y = jax.nn.leaky_relu(y + params["c2_b"][None, :, None], 0.25)
    return jax.nn.sigmoid(y).squeeze()                         # (B, sl) for B>1


def make_params(key, z_dim):
    """Deterministic PyTorch-style uniform init for Linear / Conv1d layers."""
    ks = jax.random.split(key, 6)
    b_fc = 1.0 / np.sqrt(z_dim)
    b_c1 = 1.0 / np.sqrt(10 * 3)
    b_c2 = 1.0 / np.sqrt(5 * 3)
    return {
        "fc_w": jax.random.uniform(ks[0], (100, z_dim), jnp.float32, -b_fc, b_fc),
        "fc_b": jax.random.uniform(ks[1], (100,), jnp.float32, -b_fc, b_fc),
        "c1_w": jax.random.uniform(ks[2], (5, 10, 3), jnp.float32, -b_c1, b_c1),
        "c1_b": jax.random.uniform(ks[3], (5,), jnp.float32, -b_c1, b_c1),
        "c2_w": jax.random.uniform(ks[4], (1, 5, 3), jnp.float32, -b_c2, b_c2),
        "c2_b": jax.random.uniform(ks[5], (1,), jnp.float32, -b_c2, b_c2),
    }


if __name__ == "__main__":
    # params implied by the module: z_dim (latent), sl (decoded sequence length).
    Z_DIM = 20
    SL = 16
    BATCH = 2

    root = jax.random.PRNGKey(0)
    k_z, k_p = jax.random.split(root)
    z = jax.random.normal(k_z, (BATCH, Z_DIM), jnp.float32)
    params = make_params(k_p, Z_DIM)

    forward = build_conv_dec(params, SL)      # fold + pad + cast once
    out = jax.block_until_ready(forward(z))

    ref = conv_dec_reference(z, params, SL)
    assert out.shape == (BATCH, SL)
    # Tolerance leaves slack for bf16 MXU-operand matmuls (f32 accumulation)
    # vs the f32 XLA conv reference path.
    assert jnp.allclose(out, ref, atol=1e-2, rtol=1e-5), "mismatch vs JAX reference"

    print("KERNEL_OK")
</pallas_src>

<mosaic_0001>
module attributes {stable_mosaic.version = 11 : i64} {
  func.func @conv_dec_kernel(%arg0: i32, %arg1: memref<8x32xf32, #tpu.memory_space<vmem>>, %arg2: memref<32x128xbf16, #tpu.memory_space<vmem>>, %arg3: memref<1x128xf32, #tpu.memory_space<vmem>>, %arg4: memref<128x128xbf16, #tpu.memory_space<vmem>>, %arg5: memref<1x128xf32, #tpu.memory_space<vmem>>, %arg6: memref<128x16xbf16, #tpu.memory_space<vmem>>, %arg7: memref<1x16xf32, #tpu.memory_space<vmem>>, %arg8: memref<8x16xf32, #tpu.memory_space<vmem>>) attributes {dimension_semantics = [#tpu.dimension_semantics<parallel>], iteration_bounds = array<i64: 1>, scalar_prefetch = 0 : i64, scratch_operands = 0 : i64, tpu.core_type = #tpu.core_type<tc>, window_params = [{transform_indices = @transform_0, window_bounds = array<i64: 8, 32>}, {pipeline_mode = #tpu.pipeline_mode<synchronous>, transform_indices = @transform_1, window_bounds = array<i64: 32, 128>}, {pipeline_mode = #tpu.pipeline_mode<synchronous>, transform_indices = @transform_2, window_bounds = array<i64: 1, 128>}, {pipeline_mode = #tpu.pipeline_mode<synchronous>, transform_indices = @transform_3, window_bounds = array<i64: 128, 128>}, {pipeline_mode = #tpu.pipeline_mode<synchronous>, transform_indices = @transform_4, window_bounds = array<i64: 1, 128>}, {pipeline_mode = #tpu.pipeline_mode<synchronous>, transform_indices = @transform_5, window_bounds = array<i64: 128, 16>}, {pipeline_mode = #tpu.pipeline_mode<synchronous>, transform_indices = @transform_6, window_bounds = array<i64: 1, 16>}, {transform_indices = @transform_7, window_bounds = array<i64: 8, 16>}]} {
    %c0 = arith.constant 0 : index
    %c0_0 = arith.constant 0 : index
    %0 = vector.load %arg1[%c0, %c0_0] : memref<8x32xf32, #tpu.memory_space<vmem>>, vector<8x32xf32>
    %1 = arith.truncf %0 : vector<8x32xf32> to vector<8x32xbf16>
    %c0_1 = arith.constant 0 : index
    %c0_2 = arith.constant 0 : index
    %2 = vector.load %arg2[%c0_1, %c0_2] : memref<32x128xbf16, #tpu.memory_space<vmem>>, vector<32x128xbf16>
    %cst = arith.constant dense<0.000000e+00> : vector<8x128xf32>
    %3 = tpu.matmul %1, %2, %cst {dimension_numbers = #tpu.dot_dimension_numbers<[1], [0], [0], [1], [0, 0, 1, 1], [], []>} : vector<8x32xbf16>, vector<32x128xbf16>, vector<8x128xf32> -> vector<8x128xf32>
    %c0_3 = arith.constant 0 : index
    %c0_4 = arith.constant 0 : index
    %4 = vector.load %arg3[%c0_3, %c0_4] : memref<1x128xf32, #tpu.memory_space<vmem>>, vector<1x128xf32>
    %5 = vector.broadcast %4 : vector<1x128xf32> to vector<8x128xf32>
    %6 = arith.addf %3, %5 : vector<8x128xf32>
    %cst_5 = arith.constant 0.000000e+00 : f32
    %7 = vector.broadcast %cst_5 : f32 to vector<8x128xf32>
    %8 = arith.maximumf %6, %7 : vector<8x128xf32>
    %9 = math.absf %6 : vector<8x128xf32>
    %cst_6 = arith.constant 0.000000e+00 : f32
    %10 = vector.broadcast %cst_6 : f32 to vector<8x128xf32>
    %11 = arith.subf %10, %9 : vector<8x128xf32>
    %12 = math.exp %11 : vector<8x128xf32>
    %cst_7 = arith.constant 1.000000e+00 : f32
    %13 = vector.broadcast %cst_7 : f32 to vector<8x128xf32>
    %14 = arith.addf %13, %12 : vector<8x128xf32>
    %15 = math.log %14 : vector<8x128xf32>
    %16 = arith.addf %8, %15 : vector<8x128xf32>
    %17 = arith.truncf %16 : vector<8x128xf32> to vector<8x128xbf16>
    %c0_8 = arith.constant 0 : index
    %c0_9 = arith.constant 0 : index
    %18 = vector.load %arg4[%c0_8, %c0_9] : memref<128x128xbf16, #tpu.memory_space<vmem>>, vector<128x128xbf16>
    %cst_10 = arith.constant dense<0.000000e+00> : vector<8x128xf32>
    %19 = tpu.matmul %17, %18, %cst_10 {dimension_numbers = #tpu.dot_dimension_numbers<[1], [0], [0], [1], [0, 0, 1, 1], [], []>} : vector<8x128xbf16>, vector<128x128xbf16>, vector<8x128xf32> -> vector<8x128xf32>
    %c0_11 = arith.constant 0 : index
    %c0_12 = arith.constant 0 : index
    %20 = vector.load %arg5[%c0_11, %c0_12] : memref<1x128xf32, #tpu.memory_space<vmem>>, vector<1x128xf32>
    %21 = vector.broadcast %20 : vector<1x128xf32> to vector<8x128xf32>
    %22 = arith.addf %19, %21 : vector<8x128xf32>
    %cst_13 = arith.constant 0.000000e+00 : f32
    %23 = vector.broadcast %cst_13 : f32 to vector<8x128xf32>
    %24 = arith.cmpf oge, %22, %23 : vector<8x128xf32>
    %cst_14 = arith.constant 2.500000e-01 : f32
    %25 = vector.broadcast %cst_14 : f32 to vector<8x128xf32>
    %26 = arith.mulf %25, %22 : vector<8x128xf32>
    %27 = arith.select %24, %22, %26 : vector<8x128xi1>, vector<8x128xf32>
    %28 = arith.truncf %27 : vector<8x128xf32> to vector<8x128xbf16>
    %c0_15 = arith.constant 0 : index
    %c0_16 = arith.constant 0 : index
    %29 = vector.load %arg6[%c0_15, %c0_16] : memref<128x16xbf16, #tpu.memory_space<vmem>>, vector<128x16xbf16>
    %cst_17 = arith.constant dense<0.000000e+00> : vector<8x16xf32>
    %30 = tpu.matmul %28, %29, %cst_17 {dimension_numbers = #tpu.dot_dimension_numbers<[1], [0], [0], [1], [0, 0, 1, 1], [], []>} : vector<8x128xbf16>, vector<128x16xbf16>, vector<8x16xf32> -> vector<8x16xf32>
    %c0_18 = arith.constant 0 : index
    %c0_19 = arith.constant 0 : index
    %31 = vector.load %arg7[%c0_18, %c0_19] : memref<1x16xf32, #tpu.memory_space<vmem>>, vector<1x16xf32>
    %32 = vector.broadcast %31 : vector<1x16xf32> to vector<8x16xf32>
    %33 = arith.addf %30, %32 : vector<8x16xf32>
    %cst_20 = arith.constant 0.000000e+00 : f32
    %34 = vector.broadcast %cst_20 : f32 to vector<8x16xf32>
    %35 = arith.cmpf oge, %33, %34 : vector<8x16xf32>
    %cst_21 = arith.constant 2.500000e-01 : f32
    %36 = vector.broadcast %cst_21 : f32 to vector<8x16xf32>
    %37 = arith.mulf %36, %33 : vector<8x16xf32>
    %38 = arith.select %35, %33, %37 : vector<8x16xi1>, vector<8x16xf32>
    %cst_22 = arith.constant 0.000000e+00 : f32
    %39 = vector.broadcast %cst_22 : f32 to vector<8x16xf32>
    %40 = arith.subf %39, %38 : vector<8x16xf32>
    %41 = math.exp %40 : vector<8x16xf32>
    %cst_23 = arith.constant 1.000000e+00 : f32
    %42 = vector.broadcast %cst_23 : f32 to vector<8x16xf32>
    %43 = arith.addf %42, %41 : vector<8x16xf32>
    %44 = tpu.reciprocal %43 {approx = true} : vector<8x16xf32> -> vector<8x16xf32>
    %c0_24 = arith.constant 0 : index
    %c0_25 = arith.constant 0 : index
    %45 = vector.load %arg8[%c0_24, %c0_25] : memref<8x16xf32, #tpu.memory_space<vmem>>, vector<8x16xf32>
    tpu.vector_store %arg8[%c0_24, %c0_25], %44 {strides = array<i32>} : memref<8x16xf32, #tpu.memory_space<vmem>>, vector<8x16xf32>,
    return
  }
  func.func @transform_0(%arg0: i32) -> (i32, i32) {
    %c0_i32 = arith.constant 0 : i32
    %c0_i32_0 = arith.constant 0 : i32
    return %arg0, %c0_i32 : i32, i32
  }
  func.func @transform_1(%arg0: i32) -> (i32, i32) {
    %c0_i32 = arith.constant 0 : i32
    %c0_i32_0 = arith.constant 0 : i32
    %c0_i32_1 = arith.constant 0 : i32
    return %c0_i32, %c0_i32_0 : i32, i32
  }
  func.func @transform_2(%arg0: i32) -> (i32, i32) {
    %c0_i32 = arith.constant 0 : i32
    %c0_i32_0 = arith.constant 0 : i32
    %c0_i32_1 = arith.constant 0 : i32
    return %c0_i32, %c0_i32_0 : i32, i32
  }
  func.func @transform_3(%arg0: i32) -> (i32, i32) {
    %c0_i32 = arith.constant 0 : i32
    %c0_i32_0 = arith.constant 0 : i32
    %c0_i32_1 = arith.constant 0 : i32
    return %c0_i32, %c0_i32_0 : i32, i32
  }
  func.func @transform_4(%arg0: i32) -> (i32, i32) {
    %c0_i32 = arith.constant 0 : i32
    %c0_i32_0 = arith.constant 0 : i32
    %c0_i32_1 = arith.constant 0 : i32
    return %c0_i32, %c0_i32_0 : i32, i32
  }
  func.func @transform_5(%arg0: i32) -> (i32, i32) {
    %c0_i32 = arith.constant 0 : i32
    %c0_i32_0 = arith.constant 0 : i32
    %c0_i32_1 = arith.constant 0 : i32
    return %c0_i32, %c0_i32_0 : i32, i32
  }
  func.func @transform_6(%arg0: i32) -> (i32, i32) {
    %c0_i32 = arith.constant 0 : i32
    %c0_i32_0 = arith.constant 0 : i32
    %c0_i32_1 = arith.constant 0 : i32
    return %c0_i32, %c0_i32_0 : i32, i32
  }
  func.func @transform_7(%arg0: i32) -> (i32, i32) {
    %c0_i32 = arith.constant 0 : i32
    %c0_i32_0 = arith.constant 0 : i32
    return %arg0, %c0_i32 : i32, i32
  }
}

</mosaic_0001>

<bundles_post_ra>
// kernel: forward.1
= control target key start
LH: loop header
LB: loop body
LE: loop exit
PB: predicated region body
PF: predicated region fallthrough
CT: control target
= control target key end

     0   :  { %12 = vsyncpa [#allocation3], 0  ;;  %s637_s0 = inlined_call_operand.vmem [shape: f32[8,32], index: 0, kind: input, shape index: {}]   ;;  %s638_s1 = inlined_call_operand.vmem [shape: bf16[32,128], index: 1, kind: input, shape index: {}]   ;;  %s639_s2 = inlined_call_operand.vmem [shape: f32[1,128], index: 2, kind: input, shape index: {}]   ;;  %s640_s3 = inlined_call_operand.hbm [shape: bf16[128,128], index: 3, kind: input, shape index: {}]   ;;  %s641_s4 = inlined_call_operand.vmem [shape: f32[1,128], index: 4, kind: input, shape index: {}]   ;;  %s642_s5 = inlined_call_operand.hbm [shape: bf16[128,16], index: 5, kind: input, shape index: {}]   ;;  %s643_s6 = inlined_call_operand.vmem [shape: f32[1,16], index: 6, kind: input, shape index: {}]   ;;  %s644_s7 = inlined_call_operand.vmem [shape: f32[8,16], index: 7, kind: output, shape index: {}]  }
   0x1   :  { %13 = vsyncpa [#allocation5], 0  ;;  %s543_s24 = smov [#allocation2]  }
   0x2   :  { %s25_s25 = sshll.u32 %s543_s24, 4  ;;  %s26_s25 = int_to_ptr.vmem [resolvable:$true] %s25_s25 }
   0x3   :  { %s507_s26 = scalar_lea.vmem %s26_s25, 1024  ;;  %p512_p1 = scmp.lt.s32.totalorder %s26_s25, %s26_s25 }
   0x4   :  { %p508_p0 = scmp.ne.s32.totalorder %s26_s25, %s507_s26  ;;  %p513_p2 = scmp.lt.s32.totalorder %s507_s26, %s507_s26 }
   0x6   :  { %p514_p3 = por %p513_p2, %p512_p1 }
   0x8   :  { %p515_p4 = pnand %p514_p3, %p508_p0 }
   0xa   :  { %518 = shalt.err (!%p515_p4)
}
   0xb   :  { %s544_s27 = smov 64   ;;  %s545_s28 = smov 4  }
   0xc   :  { %31 = dma.hbm_to_vmem [thread:$0]  %s640_s3, 1024, %s26_s25, [#allocation3], %s544_s27, %s544_s27, %s545_s28  }
   0xd   :  { %s546_s8 = smov [#allocation4]  }
   0xe   :  { %s39_s9 = sshll.u32 %s546_s8, 4  ;;  %s40_s9 = int_to_ptr.vmem [resolvable:$true] %s39_s9 }
   0xf   :  { %s527_s10 = scalar_lea.vmem %s40_s9, 1024  ;;  %p532_p6 = scmp.lt.s32.totalorder %s40_s9, %s40_s9 }
  0x10   :  { %p528_p5 = scmp.ne.s32.totalorder %s40_s9, %s527_s10  ;;  %p533_p7 = scmp.lt.s32.totalorder %s527_s10, %s527_s10 }
  0x12   :  { %p534_p8 = por %p533_p7, %p532_p6 }
  0x14   :  { %p535_p9 = pnand %p534_p8, %p528_p5 }
  0x16   :  { %538 = shalt.err (!%p535_p9)
}
  0x17   :  { %45 = dma.hbm_to_vmem [thread:$0]  %s642_s5, 1024, %s40_s9, [#allocation5], %s544_s27, %s544_s27, %s545_s28  }
  0x18   :  { %539 = dma.done.wait [#allocation3], 1024  }
  0x19   :  { %540 = vsyncadd [#allocation3], 4294966272 }
  0x1a   :  { %541 = dma.done.wait [#allocation5], 1024  }
  0x1b   :  { %542 = vsyncadd [#allocation5], 4294966272  ;;  %v547_v0 = vmov 0.0   ;;  %vm548_vm0 = vmmov 0   ;;  %v473_v1 = vld [vmem:[%s638_s1 + $0x8] sm:$0xff]   ;;  %v474_v2 = vld [vmem:[%s638_s1] sm:$0xff]  }
  0x1c   :  { %419 = vmatprep.subr.bf16.mxu0 %v547_v0  ;;  %423 = vmatprep.mubr.msk.bf16.mxu0 %vm548_vm0, %v547_v0  ;;  %v55_v3 = vld [vmem:[%s637_s0] sm:$0xff]  ;;  %vm80_vm1 = vcmask 261120   ;;  %v475_v5 = vld [vmem:[#allocation2 + $0x38] sm:$0xff]   ;;  %v476_v6 = vld [vmem:[#allocation2 + $0x30] sm:$0xff]   ;;  %vm368_vm4 = vcmask 130048  }
  0x1d   :  { %427 = vmatprep.subr.bf16.mxu1 %v547_v0  ;;  %443 = vmatprep.mubr.msk.bf16.mxu1 %vm548_vm0, %v547_v0  ;;  %v56_v4 = vpack.c.bf16 %v55_v3, %v55_v3  ;;  %v477_v7 = vld [vmem:[#allocation2 + $0x28] sm:$0xff]   ;;  %v478_v8 = vld [vmem:[#allocation2 + $0x20] sm:$0xff]   ;;  %v479_v9 = vld [vmem:[#allocation2 + $0x18] sm:$0xff]  }
  0x1e   :  { %420 = vmatpush3.bf16.msra.mxu0 %v473_v1  ;;  %428 = vmatpush3.bf16.msra.mxu1 %v475_v5  ;;  %v480_v10 = vld [vmem:[#allocation2 + $0x10] sm:$0xff]   ;;  %v481_v11 = vld [vmem:[#allocation2 + $0x8] sm:$0xff]   ;;  %v482_v12 = vld [vmem:[#allocation2] sm:$0xff]  }
  0x1f   :  { %421 = vmatprep.subr.bf16.mxu0 %v547_v0  ;;  %429 = vmatprep.subr.bf16.mxu1 %v547_v0  ;;  %v483_v13 = vld [vmem:[#allocation4 + $0x38] sm:$0xff]   ;;  %v484_v14 = vld [vmem:[#allocation4 + $0x30] sm:$0xff]   ;;  %v485_v15 = vld [vmem:[#allocation4 + $0x28] sm:$0xff]  }
  0x20   :  { %v486_v16 = vld [vmem:[#allocation4 + $0x20] sm:$0xff]   ;;  %v487_v17 = vld [vmem:[#allocation4 + $0x18] sm:$0xff]   ;;  %v488_v18 = vld [vmem:[#allocation4 + $0x10] sm:$0xff]  }
  0x21   :  { %v376_v19 = vld [vmem:[%s639_s2] ss:$0 sm:$0xff]  ;;  %v489_v35 = vld [vmem:[#allocation4 + $0x8] sm:$0xff]  }
  0x22   :  { %422 = vmatpush3.bf16.msra.mxu0 %v474_v2  ;;  %430 = vmatpush3.bf16.msra.mxu1 %v476_v6  ;;  %v490_v36 = vld [vmem:[#allocation4] sm:$0xff]  }
  0x23   :  { %447 = vmatprep.subr.bf16.mxu0 %v547_v0  ;;  %431 = vmatprep.subr.bf16.mxu1 %v547_v0  ;;  %v380_v37 = vld [vmem:[%s641_s4] ss:$0 sm:$0xff] }
  0x24   :  { %v389_v46 = vld [vmem:[%s643_s6] ss:$0 sm:$0xff] }
  0x25   :  { %424 = vmatmul.mubr.msk.bf16.vlgmr.msra.gmra.mxu0 %vm80_vm1, %v56_v4 }
  0x26   :  { %463 = vmatprep.mubr.msk.bf16.mxu0 %vm548_vm0, %v547_v0  ;;  %432 = vmatpush3.bf16.msra.mxu1 %v477_v7 }
  0x27   :  { %433 = vmatprep.subr.bf16.mxu1 %v547_v0  ;;  %448 = vmatpush3.bf16.msra.mxu0 %v483_v13 }
  0x28   :  { %449 = vmatprep.subr.bf16.mxu0 %v547_v0 }
  0x2a   :  { %434 = vmatpush3.bf16.msra.mxu1 %v478_v8 }
  0x2b   :  { %435 = vmatprep.subr.bf16.mxu1 %v547_v0  ;;  %450 = vmatpush3.bf16.msra.mxu0 %v484_v14 }
  0x2c   :  { %451 = vmatprep.subr.bf16.mxu0 %v547_v0 }
  0x2e   :  { %436 = vmatpush3.bf16.msra.mxu1 %v479_v9 }
  0x2f   :  { %437 = vmatprep.subr.bf16.mxu1 %v547_v0  ;;  %452 = vmatpush3.bf16.msra.mxu0 %v485_v15 }
  0x30   :  { %453 = vmatprep.subr.bf16.mxu0 %v547_v0 }
  0x32   :  { %438 = vmatpush3.bf16.msra.mxu1 %v480_v10 }
  0x33   :  { %439 = vmatprep.subr.bf16.mxu1 %v547_v0  ;;  %454 = vmatpush3.bf16.msra.mxu0 %v486_v16 }
  0x34   :  { %455 = vmatprep.subr.bf16.mxu0 %v547_v0 }
  0x36   :  { %440 = vmatpush3.bf16.msra.mxu1 %v481_v11 }
  0x37   :  { %441 = vmatprep.subr.bf16.mxu1 %v547_v0  ;;  %456 = vmatpush3.bf16.msra.mxu0 %v487_v17 }
  0x38   :  { %457 = vmatprep.subr.bf16.mxu0 %v547_v0 }
  0x3a   :  { %442 = vmatpush3.bf16.msra.mxu1 %v482_v12 }
  0x3b   :  { %458 = vmatpush3.bf16.msra.mxu0 %v488_v18 }
  0x3c   :  { %459 = vmatprep.subr.bf16.mxu0 %v547_v0 }
  0x3f   :  { %460 = vmatpush3.bf16.msra.mxu0 %v489_v35 }
  0x40   :  { %461 = vmatprep.subr.bf16.mxu0 %v547_v0 }
  0x43   :  { %462 = vmatpush3.bf16.msra.mxu0 %v490_v36 }
  0xe5   :  { %v118_v20 = vpop.f32.mrf.mxu0 }
  0xe6   :  { %v119_v21 = vadd.f32 %v376_v19, %v118_v20 }
  0xe7   :  { %v425_v22 = vpop.f32.mrf.mxu0 }
  0xe8   :  { %v125_v23 = vand.u32 2147483647, %v119_v21  ;;  %v124_v31 = vmax.f32 %v119_v21, 0.0 }
  0xe9   :  { %v121_v24 = vpop.f32.mrf.mxu0 }
  0xea   :  { %v126_v25 = vsub.f32 0.0, %v125_v23 }
  0xeb   :  { %v426_v26 = vpop.f32.mrf.mxu0 }
  0xec   :  { %v127_v27 = vmul.f32 1.442695, %v126_v25 }
  0xee   :  { %491 = vpow2.f32 %v127_v27 }
  0xfb   :  { %v492_v28 = vpop.eup %491 }
  0xfc   :  { %v129_v29 = vadd.f32 1.0, %v492_v28 }
  0xfe   :  { %493 = vlog2.f32 %v129_v29 }
 0x10b   :  { %v494_v30 = vpop.eup %493 }
 0x10c   :  { %v131_v32 = vmul.f32 0.6931472, %v494_v30 }
 0x10e   :  { %v132_v33 = vadd.f32 %v131_v32, %v124_v31 }
 0x110   :  { %v133_v34 = vpack.c.bf16 %v132_v33, %v132_v33 }
 0x112   :  { %444 = vmatmul.mubr.bf16.vlgmr.msra.gmra.mxu1 %v133_v34 }
 0x1d2   :  { %v239_v38 = vpop.f32.mrf.mxu1 }
 0x1d3   :  { %v240_v39 = vadd.f32 %v380_v37, %v239_v38 }
 0x1d4   :  { %v445_v40 = vpop.f32.mrf.mxu1 }
 0x1d5   :  { %vm245_vm2 = vcmp.ge.f32.partialorder %v240_v39, 0.0  ;;  %v246_v41 = vmul.f32 0.25, %v240_v39 }
 0x1d6   :  { %v242_v42 = vpop.f32.mrf.mxu1 }
 0x1d7   :  { %v247_v43 = vsel %vm245_vm2, %v240_v39, %v246_v41 }
 0x1d8   :  { %v248_v44 = vpack.c.bf16 %v247_v43, %v247_v43  ;;  %v446_v45 = vpop.f32.mrf.mxu1 }
 0x1da   :  { %464 = vmatmul.mubr.bf16.vlgmr.msra.gmra.mxu0 %v248_v44 }
 0x29a   :  { %v354_v47 = vpop.f32.mrf.mxu0 }
 0x29b   :  { %v355_v48 = vadd.f32 %v389_v46, %v354_v47 }
 0x29c   :  { %v465_v49 = vpop.f32.mrf.mxu0 }
 0x29d   :  { %vm360_vm3 = vcmp.ge.f32.partialorder %v355_v48, 0.0  ;;  %v361_v50 = vmul.f32 0.25, %v355_v48 }
 0x29e   :  { %v357_v51 = vpop.f32.mrf.mxu0 }
 0x29f   :  { %v362_v52 = vsel %vm360_vm3, %v355_v48, %v361_v50 }
 0x2a0   :  { %v363_v53 = vsub.f32 0.0, %v362_v52  ;;  %v466_v54 = vpop.f32.mrf.mxu0 }
 0x2a2   :  { %v364_v55 = vmul.f32 1.442695, %v363_v53 }
 0x2a4   :  { %495 = vpow2.f32 %v364_v55 }
 0x2b1   :  { %v496_v56 = vpop.eup %495 }
 0x2b2   :  { %v366_v57 = vadd.f32 1.0, %v496_v56 }
 0x2b4   :  { %497 = vrcp.f32 %v366_v57 }
 0x2c1   :  { %v498_v58 = vpop.eup %497 }
 0x2c2   :  { %369 = vst.msk [vmem:[%s644_s7] sm:$0xff] %vm368_vm4, %v498_v58 }
 0x2c3   :  { %374 = vsyncpa [#allocation3], 1 }
 0x2c4   :  { %375 = vsyncpa [#allocation5], 1 }

</bundles_post_ra>
